<compile_context>
chip_gen: v5e
topology: v5e:2x2
jax: 0.10.0
libtpu: 0.0.40
codegen_flags: <defaults>
</compile_context>

<pallas_src>
import jax
import jax.numpy as jnp
from jax import lax
from jax.experimental import pallas as pl
from jax.experimental.pallas import tpu as pltpu

B = 2
H = 128                       # input length (NCHW input is (B, 1, H, 1))
EPS = 1e-5
NEG_SLOPE = 0.1

L1 = (H - 7) // 2 + 1         # 61  conv1 output length
L2 = (L1 - 5) // 2 + 1        # 29  conv2 output length
L3 = (L2 - 3) // 2 + 1        # 14  conv3 output length
S_ROWS = L3 + 1               # rows of phase-2-folded conv2 output
R1_ROWS = L3 + 2              # rows of phase-4-folded conv1 output
HP = 8 * R1_ROWS + 8          # padded input length for the conv1 im2col

assert (L1, L2, L3) == (61, 29, 14)
assert 4 * R1_ROWS - 1 >= 2 * (L2 - 1) + 4      # conv1 positions cover conv2 needs
assert 2 * S_ROWS - 1 >= 2 * (L3 - 1) + 2       # conv2 positions cover conv3 needs


# ------------------------------- Pallas kernel -------------------------------

def afnet_kernel(slab1_ref, w1_ref, w2_ref, w3_ref, wf1_ref, wf2_ref, aux_ref,
                 out_ref):
    aux = aux_ref[...]                      # (8, 64), load once, slice as values
    b1 = aux[0:1, :]                        # conv1 bias (phase/batch tiled)
    b2 = aux[1:2, :]                        # conv2 bias + folded BN1 shift
    b3 = aux[2:3, :]                        # conv3 bias + folded BN2 shift
    bf1 = aux[3:4, 0:32]                    # fc1 bias + folded BN3 shift
    bf2 = aux[4:5, 0:4]                     # fc2 bias

    def leaky(x):
        return jnp.maximum(x, NEG_SLOPE * x)

    # conv1 (+bias, LeakyReLU). BN1 is folded into W2/b2.
    t1 = jnp.dot(slab1_ref[...], w1_ref[...],
                 preferred_element_type=jnp.float32) + b1
    a1 = leaky(t1)                          # (R1_ROWS, 64): 4 positions x 2 batch x 8ch

    # conv2: two consecutive folded rows -> one (S_ROWS, 128) slab, one matmul.
    slab2 = jnp.concatenate([a1[0:S_ROWS, :], a1[1:S_ROWS + 1, :]], axis=1)
    a2 = leaky(jnp.dot(slab2, w2_ref[...],
                       preferred_element_type=jnp.float32) + b2)
    # a2: (S_ROWS, 64): 2 positions x 2 batch x 16ch. BN2 folded into W3/b3.

    # conv3: (L3, 128) slab, one matmul.
    slab3 = jnp.concatenate([a2[0:L3, :], a2[1:L3 + 1, :]], axis=1)
    a3 = leaky(jnp.dot(slab3, w3_ref[...],
                       preferred_element_type=jnp.float32) + b3)
    # a3: (L3, 64): 2 batch x 32ch. BN3 folded into fc1.

    # Global average pool over the length axis (all L3 rows are valid outputs).
    pooled = jnp.sum(a3, axis=0, keepdims=True) * (1.0 / L3)        # (1, 64)

    # fc1 (Dropout is identity in eval) -> LeakyReLU -> fc2. Batch-block-diagonal.
    a4 = leaky(jnp.dot(pooled, wf1_ref[...],
                       preferred_element_type=jnp.float32) + bf1)   # (1, 32)
    out_ref[...] = jnp.dot(a4, wf2_ref[...],
                           preferred_element_type=jnp.float32) + bf2  # (1, 4)


# --------------------------- wrapper / weight packing ---------------------------

def pack_inputs(x_nchw, p):
    f32 = jnp.float32
    eye2 = jnp.eye(2, dtype=f32)
    eye4 = jnp.eye(4, dtype=f32)

    # ---- conv1 im2col slab (built by XLA, outside the kernel) ----
    x_l = x_nchw[:, 0, :, 0]                                   # (B, H)
    x_pad = jnp.pad(x_l, ((0, 0), (0, HP - H)))
    idx = (8 * jnp.arange(R1_ROWS)[:, None, None]
           + 2 * jnp.arange(4)[None, :, None]
           + jnp.arange(7)[None, None, :])                     # (R1, 4, 7)
    taps = x_pad[:, idx]                                       # (B, R1, 4, 7)
    slab1 = jnp.transpose(taps, (1, 2, 3, 0)).reshape(R1_ROWS, 4 * 7 * B)

    # ---- BN affine (running stats) per layer ----
    def bn_affine(i):
        scale = p[f'bn{i}_gamma'] / jnp.sqrt(p[f'bn{i}_var'] + EPS)
        shift = p[f'bn{i}_beta'] - p[f'bn{i}_mean'] * scale
        return scale, shift

    s1, t1 = bn_affine(1)
    s2, t2 = bn_affine(2)
    s3, t3 = bn_affine(3)

    # ---- conv kernels as (k, cin, cout) ----
    w1_ko = p['conv1_w'][:, 0, :, 0].T                          # (7, 8)
    w2_kco = jnp.transpose(p['conv2_w'][:, :, :, 0], (2, 1, 0))  # (5, 8, 16)
    w3_kco = jnp.transpose(p['conv3_w'][:, :, :, 0], (2, 1, 0))  # (3, 16, 32)

    # ---- W1: (4*7*2, 4*2*8) block-diag over phase(4) x batch(2) ----
    W1 = jnp.einsum('pq,bB,ko->pkbqBo', eye4, eye2, w1_ko).reshape(56, 64)

    # ---- W2: (2*4*2*8, 2*2*16); nonzero where 4q+p == 2P+k ----
    u2 = 4 * jnp.arange(2)[:, None] + jnp.arange(4)[None, :]     # (q, p)
    v2 = 2 * jnp.arange(2)[:, None] + jnp.arange(5)[None, :]     # (P, k)
    I2 = (u2[:, :, None, None] == v2[None, None, :, :]).astype(f32)
    W2 = jnp.einsum('qpPk,bB,kco->qpbcPBo', I2, eye2, w2_kco).reshape(128, 64)

    # ---- W3: (2*2*2*16, 2*32); nonzero where 2q+p == k ----
    u3 = 2 * jnp.arange(2)[:, None] + jnp.arange(2)[None, :]     # (q, p)
    I3 = (u3[:, :, None] == jnp.arange(3)[None, None, :]).astype(f32)
    W3 = jnp.einsum('qpk,bB,kco->qpbcBo', I3, eye2, w3_kco).reshape(128, 64)

    # ---- fc weights, batch-block-diagonal ----
    Wf1 = jnp.einsum('bB,co->bcBo', eye2, p['fc1_w'].T).reshape(64, 32)
    Wf2 = jnp.einsum('bB,co->bcBo', eye2, p['fc2_w'].T).reshape(32, 4)

    # ---- per-lane BN vectors in the folded layouts ----
    lane1_s, lane1_t = jnp.tile(s1, 8), jnp.tile(t1, 8)          # (64,)
    lane2_s, lane2_t = jnp.tile(s2, 4), jnp.tile(t2, 4)          # (64,)
    lane3_s, lane3_t = jnp.tile(s3, 2), jnp.tile(t3, 2)          # (64,)

    # ---- fold BN(i) into layer i+1 weights / biases ----
    cols2_s, cols2_t = jnp.tile(lane1_s, 2), jnp.tile(lane1_t, 2)   # (128,)
    W2eff = cols2_s[:, None] * W2
    b2eff = jnp.tile(p['conv2_b'], 4) + cols2_t @ W2

    cols3_s, cols3_t = jnp.tile(lane2_s, 2), jnp.tile(lane2_t, 2)   # (128,)
    W3eff = cols3_s[:, None] * W3
    b3eff = jnp.tile(p['conv3_b'], 2) + cols3_t @ W3

    Wf1eff = lane3_s[:, None] * Wf1
    bf1eff = jnp.tile(p['fc1_b'], 2) + lane3_t @ Wf1

    bias1 = jnp.tile(p['conv1_b'], 8)                            # (64,)
    bf2 = jnp.tile(p['fc2_b'], 2)                                # (4,)

    aux = jnp.zeros((8, 64), f32)
    aux = aux.at[0, :].set(bias1)
    aux = aux.at[1, :].set(b2eff)
    aux = aux.at[2, :].set(b3eff)
    aux = aux.at[3, 0:32].set(bf1eff)
    aux = aux.at[4, 0:4].set(bf2)

    return slab1, W1, W2eff, W3eff, Wf1eff, Wf2, aux


def afnet_forward(x_nchw, params):
    inputs = pack_inputs(x_nchw, params)
    out = pl.pallas_call(
        afnet_kernel,
        out_shape=jax.ShapeDtypeStruct((1, 2 * B), jnp.float32),
        in_specs=[pl.BlockSpec(memory_space=pltpu.MemorySpace.VMEM)] * len(inputs),
        out_specs=pl.BlockSpec(memory_space=pltpu.MemorySpace.VMEM),
    )(*inputs)
    return out.reshape(B, 2)


# ------------------------------ parameter init ------------------------------

def init_params(key):
    keys = iter(jax.random.split(key, 32))

    def nrm(shape, scale=0.1):
        return scale * jax.random.normal(next(keys), shape, dtype=jnp.float32)

    p = {}
    cfg = [(1, 8, 7), (8, 16, 5), (16, 32, 3)]
    for i, (cin, cout, k) in enumerate(cfg, start=1):
        p[f'conv{i}_w'] = nrm((cout, cin, k, 1))
        p[f'conv{i}_b'] = nrm((cout,))
        p[f'bn{i}_gamma'] = 1.0 + nrm((cout,))
        p[f'bn{i}_beta'] = nrm((cout,))
        p[f'bn{i}_mean'] = nrm((cout,))
        p[f'bn{i}_var'] = 0.5 + jax.random.uniform(next(keys), (cout,),
                                                   dtype=jnp.float32)
    p['fc1_w'] = nrm((16, 32))
    p['fc1_b'] = nrm((16,))
    p['fc2_w'] = nrm((2, 16))
    p['fc2_b'] = nrm((2,))
    return p


# --------------------------- pure-JAX reference ---------------------------

def afnet_reference(x_nchw, p):
    dn = ('NCHW', 'OIHW', 'NCHW')
    y = x_nchw
    for i in (1, 2, 3):
        y = lax.conv_general_dilated(y, p[f'conv{i}_w'], window_strides=(2, 1),
                                     padding='VALID', dimension_numbers=dn)
        y = y + p[f'conv{i}_b'].reshape(1, -1, 1, 1)
        y = jnp.where(y > 0, y, NEG_SLOPE * y)                   # LeakyReLU(0.1)
        scale = p[f'bn{i}_gamma'] / jnp.sqrt(p[f'bn{i}_var'] + EPS)
        shift = p[f'bn{i}_beta'] - p[f'bn{i}_mean'] * scale
        y = y * scale.reshape(1, -1, 1, 1) + shift.reshape(1, -1, 1, 1)
    pooled = jnp.mean(y, axis=(2, 3))                            # (B, 32)
    z = pooled @ p['fc1_w'].T + p['fc1_b']                       # Dropout = identity
    z = jnp.where(z > 0, z, NEG_SLOPE * z)
    return z @ p['fc2_w'].T + p['fc2_b']


if __name__ == "__main__":
    key = jax.random.PRNGKey(0)
    kx, kp = jax.random.split(key)

    # PyTorch-style input: NCHW = (B, 1, H, 1).
    x_nchw = jax.random.normal(kx, (B, 1, H, 1), dtype=jnp.float32)
    params = init_params(kp)

    out = afnet_forward(x_nchw, params)
    out = jax.block_until_ready(out)
    assert out.shape == (B, 2)

    ref = afnet_reference(x_nchw, params)
    max_err = float(jnp.max(jnp.abs(out - ref)))
    assert jnp.allclose(out, ref, atol=2e-3, rtol=2e-3), f"max abs err {max_err}"

    print("KERNEL_OK")
</pallas_src>

<mosaic_0001>
module attributes {stable_mosaic.version = 11 : i64} {
  func.func @afnet_kernel(%arg0: memref<16x56xf32, #tpu.memory_space<vmem>>, %arg1: memref<56x64xf32, #tpu.memory_space<vmem>>, %arg2: memref<128x64xf32, #tpu.memory_space<vmem>>, %arg3: memref<128x64xf32, #tpu.memory_space<vmem>>, %arg4: memref<64x32xf32, #tpu.memory_space<vmem>>, %arg5: memref<32x4xf32, #tpu.memory_space<vmem>>, %arg6: memref<8x64xf32, #tpu.memory_space<vmem>>, %arg7: memref<1x4xf32, #tpu.memory_space<vmem>>) attributes {dimension_semantics = [], scalar_prefetch = 0 : i64, scratch_operands = 0 : i64, tpu.core_type = #tpu.core_type<tc>} {
    %c0 = arith.constant 0 : index
    %c0_0 = arith.constant 0 : index
    %0 = vector.load %arg6[%c0, %c0_0] : memref<8x64xf32, #tpu.memory_space<vmem>>, vector<8x64xf32>
    %1 = vector.extract_strided_slice %0 {offsets = [0, 0], sizes = [1, 64], strides = [1, 1]} : vector<8x64xf32> to vector<1x64xf32>
    %2 = vector.extract_strided_slice %0 {offsets = [1, 0], sizes = [1, 64], strides = [1, 1]} : vector<8x64xf32> to vector<1x64xf32>
    %3 = vector.extract_strided_slice %0 {offsets = [2, 0], sizes = [1, 64], strides = [1, 1]} : vector<8x64xf32> to vector<1x64xf32>
    %4 = vector.extract_strided_slice %0 {offsets = [3, 0], sizes = [1, 32], strides = [1, 1]} : vector<8x64xf32> to vector<1x32xf32>
    %5 = vector.extract_strided_slice %0 {offsets = [4, 0], sizes = [1, 4], strides = [1, 1]} : vector<8x64xf32> to vector<1x4xf32>
    %c0_1 = arith.constant 0 : index
    %c0_2 = arith.constant 0 : index
    %6 = vector.load %arg0[%c0_1, %c0_2] : memref<16x56xf32, #tpu.memory_space<vmem>>, vector<16x56xf32>
    %c0_3 = arith.constant 0 : index
    %c0_4 = arith.constant 0 : index
    %7 = vector.load %arg1[%c0_3, %c0_4] : memref<56x64xf32, #tpu.memory_space<vmem>>, vector<56x64xf32>
    %cst = arith.constant dense<0.000000e+00> : vector<16x64xf32>
    %8 = tpu.matmul %6, %7, %cst {dimension_numbers = #tpu.dot_dimension_numbers<[1], [0], [0], [1], [0, 0, 1, 1], [], []>} : vector<16x56xf32>, vector<56x64xf32>, vector<16x64xf32> -> vector<16x64xf32>
    %9 = vector.broadcast %1 : vector<1x64xf32> to vector<16x64xf32>
    %10 = arith.addf %8, %9 : vector<16x64xf32>
    %cst_5 = arith.constant 1.000000e-01 : f32
    %11 = vector.broadcast %cst_5 : f32 to vector<16x64xf32>
    %12 = arith.mulf %11, %10 : vector<16x64xf32>
    %13 = arith.maximumf %10, %12 : vector<16x64xf32>
    %14 = vector.extract_strided_slice %13 {offsets = [0, 0], sizes = [15, 64], strides = [1, 1]} : vector<16x64xf32> to vector<15x64xf32>
    %15 = vector.extract_strided_slice %13 {offsets = [1, 0], sizes = [15, 64], strides = [1, 1]} : vector<16x64xf32> to vector<15x64xf32>
    %16 = tpu.concatenate %14, %15 in 1 : vector<15x64xf32>, vector<15x64xf32> -> vector<15x128xf32>
    %c0_6 = arith.constant 0 : index
    %c0_7 = arith.constant 0 : index
    %17 = vector.load %arg2[%c0_6, %c0_7] : memref<128x64xf32, #tpu.memory_space<vmem>>, vector<128x64xf32>
    %cst_8 = arith.constant dense<0.000000e+00> : vector<15x64xf32>
    %18 = tpu.matmul %16, %17, %cst_8 {dimension_numbers = #tpu.dot_dimension_numbers<[1], [0], [0], [1], [0, 0, 1, 1], [], []>} : vector<15x128xf32>, vector<128x64xf32>, vector<15x64xf32> -> vector<15x64xf32>
    %19 = vector.broadcast %2 : vector<1x64xf32> to vector<15x64xf32>
    %20 = arith.addf %18, %19 : vector<15x64xf32>
    %cst_9 = arith.constant 1.000000e-01 : f32
    %21 = vector.broadcast %cst_9 : f32 to vector<15x64xf32>
    %22 = arith.mulf %21, %20 : vector<15x64xf32>
    %23 = arith.maximumf %20, %22 : vector<15x64xf32>
    %24 = vector.extract_strided_slice %23 {offsets = [0, 0], sizes = [14, 64], strides = [1, 1]} : vector<15x64xf32> to vector<14x64xf32>
    %25 = vector.extract_strided_slice %23 {offsets = [1, 0], sizes = [14, 64], strides = [1, 1]} : vector<15x64xf32> to vector<14x64xf32>
    %26 = tpu.concatenate %24, %25 in 1 : vector<14x64xf32>, vector<14x64xf32> -> vector<14x128xf32>
    %c0_10 = arith.constant 0 : index
    %c0_11 = arith.constant 0 : index
    %27 = vector.load %arg3[%c0_10, %c0_11] : memref<128x64xf32, #tpu.memory_space<vmem>>, vector<128x64xf32>
    %cst_12 = arith.constant dense<0.000000e+00> : vector<14x64xf32>
    %28 = tpu.matmul %26, %27, %cst_12 {dimension_numbers = #tpu.dot_dimension_numbers<[1], [0], [0], [1], [0, 0, 1, 1], [], []>} : vector<14x128xf32>, vector<128x64xf32>, vector<14x64xf32> -> vector<14x64xf32>
    %29 = vector.broadcast %3 : vector<1x64xf32> to vector<14x64xf32>
    %30 = arith.addf %28, %29 : vector<14x64xf32>
    %cst_13 = arith.constant 1.000000e-01 : f32
    %31 = vector.broadcast %cst_13 : f32 to vector<14x64xf32>
    %32 = arith.mulf %31, %30 : vector<14x64xf32>
    %33 = arith.maximumf %30, %32 : vector<14x64xf32>
    %cst_14 = arith.constant dense<0.000000e+00> : vector<64xf32>
    %34 = vector.multi_reduction <add>, %33, %cst_14 [0] : vector<14x64xf32> to vector<64xf32>
    %35 = vector.shape_cast %34 : vector<64xf32> to vector<1x64xf32>
    %cst_15 = arith.constant 0.0714285746 : f32
    %36 = vector.broadcast %cst_15 : f32 to vector<1x64xf32>
    %37 = arith.mulf %35, %36 : vector<1x64xf32>
    %c0_16 = arith.constant 0 : index
    %c0_17 = arith.constant 0 : index
    %38 = vector.load %arg4[%c0_16, %c0_17] : memref<64x32xf32, #tpu.memory_space<vmem>>, vector<64x32xf32>
    %cst_18 = arith.constant dense<0.000000e+00> : vector<1x32xf32>
    %39 = tpu.matmul %37, %38, %cst_18 {dimension_numbers = #tpu.dot_dimension_numbers<[1], [0], [0], [1], [0, 0, 1, 1], [], []>} : vector<1x64xf32>, vector<64x32xf32>, vector<1x32xf32> -> vector<1x32xf32>
    %40 = arith.addf %39, %4 : vector<1x32xf32>
    %cst_19 = arith.constant 1.000000e-01 : f32
    %41 = vector.broadcast %cst_19 : f32 to vector<1x32xf32>
    %42 = arith.mulf %41, %40 : vector<1x32xf32>
    %43 = arith.maximumf %40, %42 : vector<1x32xf32>
    %c0_20 = arith.constant 0 : index
    %c0_21 = arith.constant 0 : index
    %44 = vector.load %arg5[%c0_20, %c0_21] : memref<32x4xf32, #tpu.memory_space<vmem>>, vector<32x4xf32>
    %cst_22 = arith.constant dense<0.000000e+00> : vector<1x4xf32>
    %45 = tpu.matmul %43, %44, %cst_22 {dimension_numbers = #tpu.dot_dimension_numbers<[1], [0], [0], [1], [0, 0, 1, 1], [], []>} : vector<1x32xf32>, vector<32x4xf32>, vector<1x4xf32> -> vector<1x4xf32>
    %46 = arith.addf %45, %5 : vector<1x4xf32>
    %c0_23 = arith.constant 0 : index
    %c0_24 = arith.constant 0 : index
    %47 = vector.load %arg7[%c0_23, %c0_24] : memref<1x4xf32, #tpu.memory_space<vmem>>, vector<1x4xf32>
    tpu.vector_store %arg7[%c0_23, %c0_24], %46 {strides = array<i32>} : memref<1x4xf32, #tpu.memory_space<vmem>>, vector<1x4xf32>,
    return
  }
}

</mosaic_0001>

<bundles_post_ra>
// kernel: tpu_custom_call.1
= control target key start
LH: loop header
LB: loop body
LE: loop exit
PB: predicated region body
PF: predicated region fallthrough
CT: control target
= control target key end

     0   :  { %s541_s0 = inlined_call_operand.vmem [shape: f32[16,56], index: 0, kind: input, shape index: {}]   ;;  %s542_s1 = inlined_call_operand.vmem [shape: f32[56,64], index: 1, kind: input, shape index: {}]   ;;  %s543_s2 = inlined_call_operand.vmem [shape: f32[128,64], index: 2, kind: input, shape index: {}]   ;;  %s544_s3 = inlined_call_operand.vmem [shape: f32[128,64], index: 3, kind: input, shape index: {}]   ;;  %s545_s4 = inlined_call_operand.vmem [shape: f32[64,32], index: 4, kind: input, shape index: {}]   ;;  %s546_s5 = inlined_call_operand.vmem [shape: f32[32,4], index: 5, kind: input, shape index: {}]   ;;  %s547_s6 = inlined_call_operand.vmem [shape: f32[8,64], index: 6, kind: input, shape index: {}]   ;;  %s548_s7 = inlined_call_operand.hbm [shape: f32[1,4], index: 7, kind: output, shape index: {}]  }
   0x1   :  { %v36_v0 = vld [vmem:[%s542_s1 + $0x30] sm:$0xff]  ;;  %v35_v1 = vld [vmem:[%s542_s1 + $0x28] sm:$0xff]  ;;  %v34_v2 = vld [vmem:[%s542_s1 + $0x20] sm:$0xff] }
   0x2   :  { %54 = vmatpush.msra.mxu0 %v36_v0 }
   0x4   :  { %55 = vmatpush.msra.mxu0 %v35_v1 }
   0x5   :  { %12 = vsyncpa [#allocation3], 0  ;;  %v33_v3 = vld [vmem:[%s542_s1 + $0x18] sm:$0xff]  ;;  %v32_v4 = vld [vmem:[%s542_s1 + $0x10] sm:$0xff]  ;;  %vm38_vm0 = vcmask 457728   ;;  %vm74_vm1 = vcmask 1046528  }
   0x6   :  { %56 = vmatpush.msra.mxu0 %v34_v2  ;;  %v31_v5 = vld [vmem:[%s542_s1 + $0x8] sm:$0xff]  ;;  %v30_v6 = vld [vmem:[%s542_s1] sm:$0xff]  ;;  %v102_v9 = vld [vmem:[%s543_s2 + $0x78] sm:$0xff]  ;;  %s315_s21 = smov 64   ;;  %vm84_vm2 = vcmask 523264   ;;  %vm189_vm3 = vcmask 521216  }
   0x7   :  { %v28_v7 = vld [vmem:[%s541_s0] sm:$0xff]  ;;  %v29_v8 = vld [vmem:[%s541_s0 + $0x8] sm:$0xff]  ;;  %v101_v10 = vld [vmem:[%s543_s2 + $0x70] sm:$0xff]  ;;  %104 = vmatpush.msra.mxu1 %v102_v9  ;;  %vm241_vm4 = vcmask 261120   ;;  %s316_s27 = smov [#allocation2]   ;;  %s274_s29 = sshll.u32 %s548_s7, 4  ;;  %s275_s29 = int_to_ptr.hbm [resolvable:$true] %s274_s29 }
   0x8   :  { %57 = vmatpush.msra.mxu0 %v33_v3  ;;  %v393_v11 = vld [vmem:[%s547_s6] sm:$0xff]  ;;  %v100_v12 = vld [vmem:[%s543_s2 + $0x68] sm:$0xff]  ;;  %v98_v16 = vld [vmem:[%s543_s2 + $0x58] sm:$0xff]  ;;  %s272_s28 = sshll.u32 %s316_s27, 4  ;;  %vm265_vm5 = vcmask 24576   ;;  %s273_s28 = int_to_ptr.vmem [resolvable:$true] %s272_s28 }
   0x9   :  { %105 = vmatpush.msra.mxu1 %v101_v10  ;;  %v99_v13 = vld [vmem:[%s543_s2 + $0x60] sm:$0xff]  ;;  %v37_v14 = vperm.slane %v393_v11, 0  ;;  %v97_v17 = vld [vmem:[%s543_s2 + $0x50] sm:$0xff]  ;;  %v96_v19 = vld [vmem:[%s543_s2 + $0x48] sm:$0xff]  ;;  %v103_v46 = vperm.slane %v393_v11, 1 }
   0xa   :  { %58 = vmatpush.msra.mxu0 %v32_v4  ;;  %v95_v20 = vld [vmem:[%s543_s2 + $0x40] sm:$0xff]  ;;  %v94_v23 = vld [vmem:[%s543_s2 + $0x38] sm:$0xff]  ;;  %v93_v25 = vld [vmem:[%s543_s2 + $0x30] sm:$0xff] }
   0xb   :  { %106 = vmatpush.msra.mxu1 %v100_v12  ;;  %v92_v28 = vld [vmem:[%s543_s2 + $0x28] sm:$0xff]  ;;  %v91_v30 = vld [vmem:[%s543_s2 + $0x20] sm:$0xff]  ;;  %v90_v33 = vld [vmem:[%s543_s2 + $0x18] sm:$0xff] }
   0xc   :  { %59 = vmatpush.msra.mxu0 %v31_v5  ;;  %v89_v35 = vld [vmem:[%s543_s2 + $0x10] sm:$0xff]  ;;  %v88_v36 = vld [vmem:[%s543_s2 + $0x8] sm:$0xff]  ;;  %v87_v37 = vld [vmem:[%s543_s2] sm:$0xff] }
   0xd   :  { %107 = vmatpush.msra.mxu1 %v99_v13  ;;  %v159_v42 = vld [vmem:[%s544_s3 + $0x78] sm:$0xff]  ;;  %v158_v43 = vld [vmem:[%s544_s3 + $0x70] sm:$0xff]  ;;  %v157_v44 = vld [vmem:[%s544_s3 + $0x68] sm:$0xff] }
   0xe   :  { %60 = vmatpush.msra.mxu0 %v30_v6  ;;  %161 = vmatpush.msra.mxu2 %v159_v42  ;;  %v156_v45 = vld [vmem:[%s544_s3 + $0x60] sm:$0xff]  ;;  %v155_v48 = vld [vmem:[%s544_s3 + $0x58] sm:$0xff]  ;;  %v154_v49 = vld [vmem:[%s544_s3 + $0x50] sm:$0xff]  ;;  %v208_v42 = vrot.slane %v393_v11, 3 }
   0xf   :  { %283 = vmatmul.msk.f32.vlgmr.msra.gmra.mxu0 %vm38_vm0, %v28_v7  ;;  %108 = vmatpush.msra.mxu1 %v98_v16  ;;  %v153_v51 = vld [vmem:[%s544_s3 + $0x48] sm:$0xff]  ;;  %v152_v52 = vld [vmem:[%s544_s3 + $0x40] sm:$0xff]  ;;  %v151_v55 = vld [vmem:[%s544_s3 + $0x38] sm:$0xff] }
  0x10   :  { %162 = vmatpush.msra.mxu2 %v158_v43  ;;  %v150_v57 = vld [vmem:[%s544_s3 + $0x30] sm:$0xff]  ;;  %v149_v60 = vld [vmem:[%s544_s3 + $0x28] sm:$0xff]  ;;  %v148_v62 = vld [vmem:[%s544_s3 + $0x20] sm:$0xff] }
  0x11   :  { %109 = vmatpush.msra.mxu1 %v97_v17  ;;  %v147_v1 = vld [vmem:[%s544_s3 + $0x18] sm:$0xff]  ;;  %v146_v3 = vld [vmem:[%s544_s3 + $0x10] sm:$0xff]  ;;  %v145_v4 = vld [vmem:[%s544_s3 + $0x8] sm:$0xff] }
  0x12   :  { %163 = vmatpush.msra.mxu2 %v157_v44  ;;  %v144_v5 = vld [vmem:[%s544_s3] sm:$0xff]  ;;  %v206_v10 = vld [vmem:[%s545_s4 + $0x38] sm:$0xff]  ;;  %v205_v12 = vld [vmem:[%s545_s4 + $0x30] sm:$0xff] }
  0x13   :  { %110 = vmatpush.msra.mxu1 %v96_v19  ;;  %221 = vmatpush.msra.mxu3 %v206_v10  ;;  %v204_v13 = vld [vmem:[%s545_s4 + $0x28] sm:$0xff]  ;;  %v201_v16 = vld [vmem:[%s545_s4 + $0x10] sm:$0xff]  ;;  %v160_v19 = vperm.slane %v393_v11, 2 }
  0x14   :  { %164 = vmatpush.msra.mxu2 %v156_v45  ;;  %v200_v17 = vld [vmem:[%s545_s4 + $0x8] sm:$0xff] }
  0x15   :  { %111 = vmatpush.msra.mxu1 %v95_v20  ;;  %222 = vmatpush.msra.mxu3 %v205_v12 }
  0x16   :  { %165 = vmatpush.msra.mxu2 %v155_v48 }
  0x17   :  { %284 = vmatmul.msk.f32.gmra.mxu0 %vm38_vm0, %v29_v8  ;;  %112 = vmatpush.msra.mxu1 %v94_v23 }
  0x18   :  { %166 = vmatpush.msra.mxu2 %v154_v49  ;;  %223 = vmatpush.msra.mxu3 %v204_v13 }
  0x19   :  { %113 = vmatpush.msra.mxu1 %v93_v25 }
  0x1a   :  { %167 = vmatpush.msra.mxu2 %v153_v51 }
  0x1b   :  { %114 = vmatpush.msra.mxu1 %v92_v28 }
  0x1c   :  { %168 = vmatpush.msra.mxu2 %v152_v52 }
  0x1d   :  { %115 = vmatpush.msra.mxu1 %v91_v30 }
  0x1e   :  { %169 = vmatpush.msra.mxu2 %v151_v55 }
  0x1f   :  { %116 = vmatpush.msra.mxu1 %v90_v33 }
  0x20   :  { %170 = vmatpush.msra.mxu2 %v150_v57 }
  0x21   :  { %117 = vmatpush.msra.mxu1 %v89_v35 }
  0x22   :  { %171 = vmatpush.msra.mxu2 %v149_v60 }
  0x23   :  { %118 = vmatpush.msra.mxu1 %v88_v36 }
  0x24   :  { %172 = vmatpush.msra.mxu2 %v148_v62 }
  0x25   :  { %119 = vmatpush.msra.mxu1 %v87_v37 }
  0x26   :  { %173 = vmatpush.msra.mxu2 %v147_v1 }
  0x28   :  { %174 = vmatpush.msra.mxu2 %v146_v3 }
  0x2a   :  { %175 = vmatpush.msra.mxu2 %v145_v4 }
  0x2c   :  { %176 = vmatpush.msra.mxu2 %v144_v5 }
  0x8c   :  { %v62_v15 = vpop.f32.mrf.mxu0 }
  0x8d   :  { %v63_v18 = vadd.f32 %v62_v15, %v37_v14  ;;  %v202_v15 = vld [vmem:[%s545_s4 + $0x18] sm:$0xff] }
  0x8f   :  { %v68_v21 = vmul.f32 0.1, %v63_v18 }
  0x91   :  { %v70_v26 = vmax.f32 %v63_v18, %v68_v21  ;;  %v199_v18 = vld [vmem:[%s545_s4] sm:$0xff]  ;;  %v238_v21 = vld [vmem:[%s546_s5 + $0x18] sm:$0xff] }
  0x93   :  { %v75_v31 = vrot.slane %v70_v26, 1 }
  0x94   :  { %v65_v22 = vpop.f32.mrf.mxu0 }
  0x95   :  { %v66_v24 = vadd.f32 %v65_v22, %v37_v14  ;;  %v203_v14 = vld [vmem:[%s545_s4 + $0x20] sm:$0xff] }
  0x96   :  { %224 = vmatpush.msra.mxu3 %v203_v14 }
  0x97   :  { %v69_v27 = vmul.f32 0.1, %v66_v24 }
  0x98   :  { %225 = vmatpush.msra.mxu3 %v202_v15 }
  0x99   :  { %v71_v29 = vmax.f32 %v66_v24, %v69_v27 }
  0x9a   :  { %226 = vmatpush.msra.mxu3 %v201_v16 }
  0x9b   :  { %v76_v32 = vrot.slane %v71_v29, 1 }
  0x9c   :  { %227 = vmatpush.msra.mxu3 %v200_v17 }
  0x9d   :  { %v77_v34 = vsel %vm74_vm1, %v75_v31, %v76_v32 }
  0x9e   :  { %78 = vrot.lane.b32.xlu0 %v77_v34, %s315_s21  ;;  %228 = vmatpush.msra.mxu3 %v199_v18 }
  0xa0   :  { %257 = vmatpush.msrb.mxu3 %v238_v21 }
  0xa6   :  { %80 = vrot.lane.b32.xlu0 %v76_v32, %s315_s21 }
 0x110   :  { %v79_v38 = vpop.permute.xlu0 %78 }
 0x111   :  { %v85_v39 = vsel %vm84_vm2, %v70_v26, %v79_v38 }
 0x112   :  { %120 = vmatmul.f32.vlgmr.msra.gmra.mxu1 %v85_v39  ;;  %v237_v39 = vld [vmem:[%s546_s5 + $0x10] sm:$0xff] }
 0x113   :  { %258 = vmatpush.msrb.mxu3 %v237_v39 }
 0x118   :  { %v81_v40 = vpop.permute.xlu0 %80 }
 0x119   :  { %v86_v41 = vsel %vm84_vm2, %v71_v29, %v81_v40  ;;  %v236_v40 = vld [vmem:[%s546_s5 + $0x8] sm:$0xff] }
 0x11a   :  { %123 = vmatmul.f32.gmra.mxu1 %v86_v41  ;;  %259 = vmatpush.msrb.mxu3 %v236_v40  ;;  %v235_v41 = vld [vmem:[%s546_s5] sm:$0xff] }
 0x11c   :  { %260 = vmatpush.msrb.mxu3 %v235_v41 }
 0x18f   :  { %v121_v47 = vpop.f32.mrf.mxu1 }
 0x190   :  { %v122_v50 = vadd.f32 %v121_v47, %v103_v46  ;;  %v239_v47 = vrot.slane %v393_v11, 4 }
 0x192   :  { %v127_v53 = vmul.f32 0.1, %v122_v50 }
 0x194   :  { %v129_v58 = vmax.f32 %v122_v50, %v127_v53 }
 0x196   :  { %v133_v63 = vrot.slane %v129_v58, 1 }
 0x197   :  { %v124_v54 = vpop.f32.mrf.mxu1 }
 0x198   :  { %v125_v56 = vadd.f32 %v124_v54, %v103_v46 }
 0x19a   :  { %v128_v59 = vmul.f32 0.1, %v125_v56 }
 0x19c   :  { %v130_v61 = vmax.f32 %v125_v56, %v128_v59 }
 0x19e   :  { %v134_v0 = vrot.slane %v130_v61, 1 }
 0x1a0   :  { %v135_v2 = vsel %vm74_vm1, %v133_v63, %v134_v0 }
 0x1a1   :  { %136 = vrot.lane.b32.xlu1 %v135_v2, %s315_s21 }
 0x1a9   :  { %138 = vrot.lane.b32.xlu1 %v134_v0, %s315_s21 }
 0x213   :  { %v137_v6 = vpop.permute.xlu1 %136 }
 0x214   :  { %v142_v7 = vsel %vm84_vm2, %v129_v58, %v137_v6 }
 0x215   :  { %177 = vmatmul.f32.vlgmr.msra.gmra.mxu2 %v142_v7 }
 0x21b   :  { %v139_v8 = vpop.permute.xlu1 %138 }
 0x21c   :  { %v143_v9 = vsel %vm84_vm2, %v130_v61, %v139_v8 }
 0x21d   :  { %180 = vmatmul.f32.gmra.mxu2 %v143_v9 }
 0x298   :  { %v178_v20 = vpop.f32.mrf.mxu2 }
 0x299   :  { %v179_v22 = vadd.f32 %v178_v20, %v160_v19 }
 0x29b   :  { %v184_v23 = vmul.f32 0.1, %v179_v22 }
 0x29d   :  { %v186_v26 = vmax.f32 %v179_v22, %v184_v23 }
 0x29f   :  { %v188_v29 = vsel %vm84_vm2, %v186_v26, 0.0 }
 0x2a0   :  { %v181_v24 = vpop.f32.mrf.mxu2 }
 0x2a1   :  { %v182_v25 = vadd.f32 %v181_v24, %v160_v19 }
 0x2a3   :  { %v185_v27 = vmul.f32 0.1, %v182_v25 }
 0x2a5   :  { %v187_v28 = vmax.f32 %v182_v25, %v185_v27 }
 0x2a7   :  { %v190_v30 = vsel %vm189_vm3, %v187_v28, 0.0 }
 0x2a8   :  { %v191_v31 = vadd.f32 %v190_v30, %v188_v29 }
 0x2aa   :  { %v192_v32 = vrot.slane %v191_v31, 4 }
 0x2ac   :  { %v193_v33 = vadd.f32 %v192_v32, %v191_v31 }
 0x2ae   :  { %v194_v34 = vrot.slane %v193_v33, 2 }
 0x2b0   :  { %v195_v35 = vadd.f32 %v194_v34, %v193_v33 }
 0x2b2   :  { %v196_v36 = vrot.slane %v195_v35, 1 }
 0x2b4   :  { %v197_v37 = vadd.f32 %v196_v36, %v195_v35 }
 0x2b6   :  { %v198_v38 = vmul.f32 0.071428575, %v197_v37 }
 0x2b8   :  { %285 = vmatmul.msk.f32.vlgmr.msra.gmra.mxu3 %vm84_vm2, %v198_v38 }
 0x33b   :  { %v230_v43 = vpop.f32.mrf.mxu3 }
 0x33c   :  { %v231_v44 = vadd.f32 %v230_v43, %v208_v42 }
 0x33e   :  { %v233_v45 = vmul.f32 0.1, %v231_v44 }
 0x340   :  { %v234_v46 = vmax.f32 %v231_v44, %v233_v45 }
 0x342   :  { %286 = vmatmul.msk.f32.vlgmr.msrb.gmra.mxu3 %vm241_vm4, %v234_v46 }
 0x3c5   :  { %v262_v48 = vpop.f32.mrf.mxu3 }
 0x3c6   :  { %v263_v49 = vadd.f32 %v262_v48, %v239_v47 }
 0x3c8   :  { %266 = vst.msk [vmem:[#allocation2] sm:$0x1] %vm265_vm5, %v263_v49 }
 0x3c9   :  { %277 = dma.vmem_to_hbm [thread:$0]  %s273_s28, 16, %s275_s29, [#allocation3]  }
 0x3ca   :  { %313 = dma.done.wait [#allocation3], 16  }
 0x3cb   :  { %314 = vsyncadd [#allocation3], 4294967280 }
 0x3cc   :  { %282 = vsyncpa [#allocation3], 1 }

</bundles_post_ra>
